<compile_context>
chip_gen: v6e
topology: v6e:2x2x1
jax: 0.10.0
libtpu: 0.0.40
codegen_flags: <defaults>
</compile_context>

<pallas_src>
import functools
import math

import jax
import jax.numpy as jnp
from jax.experimental import pallas as pl
from jax.experimental.pallas import tpu as pltpu


_VMEM_LIMIT = 48 * 1024 * 1024  # stays inside v7x's 64 MiB physical VMEM with headroom


def _round_up(x, m):
    return (x + m - 1) // m * m


def _pick_tile(dim):
    for t in (512, 256, 128):
        if dim % t == 0:
            return t
    return 128


# ----------------------------------------------------------------------------
# Pallas kernels
# ----------------------------------------------------------------------------

def _matmul_kernel(*refs, apply_silu, has_residual):
    if has_residual:
        a_ref, b_ref, bias_ref, res_ref, o_ref, acc_ref = refs
    else:
        a_ref, b_ref, bias_ref, o_ref, acc_ref = refs
        res_ref = None
    k = pl.program_id(2)

    @pl.when(k == 0)
    def _():
        acc_ref[...] = jnp.zeros_like(acc_ref)

    acc_ref[...] += jnp.dot(a_ref[...], b_ref[...],
                            preferred_element_type=jnp.float32)

    @pl.when(k == pl.num_programs(2) - 1)
    def _():
        out = acc_ref[...] + bias_ref[...]
        if apply_silu:
            out = out * jax.nn.sigmoid(out)
        if has_residual:
            out = out + res_ref[...]
        o_ref[...] = out.astype(o_ref.dtype)


@functools.partial(jax.jit, static_argnames=("n_cols", "apply_silu"))
def _pallas_matmul(a, wp, bp, n_cols, apply_silu=False, residual=None):
    """a: (M, K); wp: (Kp, Np) bf16 pre-padded weight; bp: (1, Np) f32 bias.

    residual (optional): (M, n_cols) f32, added to the result inside the kernel.
    """
    M, K = a.shape
    Kp, Np = wp.shape
    Mp = _round_up(max(M, 1), 128)
    a = a.astype(jnp.bfloat16)
    if (M, K) != (Mp, Kp):
        a = jnp.zeros((Mp, Kp), jnp.bfloat16).at[:M, :K].set(a)
    tm, tn, tk = _pick_tile(Mp), _pick_tile(Np), _pick_tile(Kp)
    grid = (Mp // tm, Np // tn, Kp // tk)

    has_residual = residual is not None
    inputs = [a, wp, bp]
    in_specs = [
        pl.BlockSpec((tm, tk), lambda i, j, k: (i, k)),
        pl.BlockSpec((tk, tn), lambda i, j, k: (k, j)),
        pl.BlockSpec((1, tn), lambda i, j, k: (0, j)),
    ]
    res_bytes = 0
    if has_residual:
        r = residual.astype(jnp.float32).reshape(M, n_cols)
        if r.shape != (Mp, Np):
            r = jnp.zeros((Mp, Np), jnp.float32).at[:M, :n_cols].set(r)
        inputs.append(r)
        in_specs.append(pl.BlockSpec((tm, tn), lambda i, j, k: (i, j)))
        res_bytes = Mp * Np * 4

    cost = pl.CostEstimate(
        flops=2 * Mp * Np * Kp,
        transcendentals=Mp * Np if apply_silu else 0,
        bytes_accessed=Mp * Kp * 2 + Kp * Np * 2 + Mp * Np * 4 + res_bytes)

    out = pl.pallas_call(
        functools.partial(_matmul_kernel, apply_silu=apply_silu,
                          has_residual=has_residual),
        out_shape=jax.ShapeDtypeStruct((Mp, Np), jnp.float32),
        grid_spec=pltpu.PrefetchScalarGridSpec(
            num_scalar_prefetch=0,
            grid=grid,
            in_specs=in_specs,
            out_specs=pl.BlockSpec((tm, tn), lambda i, j, k: (i, j)),
            scratch_shapes=[pltpu.VMEM((tm, tn), jnp.float32)]),
        compiler_params=pltpu.CompilerParams(
            dimension_semantics=("parallel", "parallel", "arbitrary"),
            vmem_limit_bytes=_VMEM_LIMIT),
        cost_estimate=cost,
    )(*inputs)
    return out[:M, :n_cols]


def _groupnorm_kernel(x_ref, sc_ref, sh_ref, o_ref, *, groups, eps, apply_silu):
    x = x_ref[...]                                      # (Bt, HW, C) f32
    _, HW, C = x.shape
    cg = C // groups
    s1 = jnp.sum(x, axis=1)                             # (Bt, C) per-channel sums
    s2 = jnp.sum(x * x, axis=1)
    # per-channel -> per-group pooling matrix: block-diagonal ones (C, C)
    gi = jax.lax.broadcasted_iota(jnp.int32, (C, C), 0) // cg
    gj = jax.lax.broadcasted_iota(jnp.int32, (C, C), 1) // cg
    pool = (gi == gj).astype(jnp.float32)
    gs1 = jnp.dot(s1, pool, preferred_element_type=jnp.float32)
    gs2 = jnp.dot(s2, pool, preferred_element_type=jnp.float32)
    n = jnp.float32(HW * cg)
    mean = gs1 / n
    var = jnp.maximum(gs2 / n - mean * mean, 0.0)
    inv = jax.lax.rsqrt(var + eps)
    y = (x - mean[:, None, :]) * inv[:, None, :]
    y = y * sc_ref[...] + sh_ref[...]                   # (Bt, 1, C) broadcast, lane-dense
    if apply_silu:
        y = y * jax.nn.sigmoid(y)
    o_ref[...] = y.astype(o_ref.dtype)


@functools.partial(jax.jit, static_argnames=("groups", "eps", "apply_silu"))
def pallas_group_norm(x, scale, shift, groups, eps=1e-5, apply_silu=False):
    """x: (B, H, W, C) NHWC; scale/shift: (B, C) per-sample per-channel affine."""
    B, H, W, C = x.shape
    HW = H * W
    xr = x.astype(jnp.float32).reshape(B, HW, C)
    sc = scale.astype(jnp.float32).reshape(B, 1, C)
    sh = shift.astype(jnp.float32).reshape(B, 1, C)
    budget = 1 << 20                                    # elements per x block (4 MiB f32)
    bt = 1
    for d in range(1, B + 1):
        if B % d == 0 and d * HW * C <= budget:
            bt = d
    # TODO(synk): for very large H*W even one batch row exceeds the budget; a two-pass
    # (stats then normalize) tiling over HW would be needed in that regime.
    out = pl.pallas_call(
        functools.partial(_groupnorm_kernel, groups=groups, eps=eps,
                          apply_silu=apply_silu),
        out_shape=jax.ShapeDtypeStruct((B, HW, C), jnp.float32),
        grid=(B // bt,),
        in_specs=[
            pl.BlockSpec((bt, HW, C), lambda i: (i, 0, 0)),
            pl.BlockSpec((bt, 1, C), lambda i: (i, 0, 0)),
            pl.BlockSpec((bt, 1, C), lambda i: (i, 0, 0)),
        ],
        out_specs=pl.BlockSpec((bt, HW, C), lambda i: (i, 0, 0)),
        compiler_params=pltpu.CompilerParams(
            dimension_semantics=("parallel",),
            vmem_limit_bytes=_VMEM_LIMIT),
    )(xr, sc, sh)
    return out.reshape(B, H, W, C)


def _attention_kernel(q_ref, k_ref, v_ref, mask_ref, o_ref, m_sc, l_sc, acc_sc,
                      *, heads, head_dim, scale):
    kv = pl.program_id(2)

    @pl.when(kv == 0)
    def _():
        m_sc[...] = jnp.full_like(m_sc, -jnp.inf)
        l_sc[...] = jnp.zeros_like(l_sc)
        acc_sc[...] = jnp.zeros_like(acc_sc)

    qb = q_ref[0]                                       # (tq, heads*head_dim) bf16
    kb = k_ref[0]                                       # (tkv, heads*head_dim) bf16
    vb = v_ref[0]
    mask = mask_ref[0]                                  # (1, tkv) f32

    for h in range(heads):
        sl = slice(h * head_dim, (h + 1) * head_dim)
        s = jax.lax.dot_general(qb[:, sl], kb[:, sl], (((1,), (1,)), ((), ())),
                                preferred_element_type=jnp.float32) * scale
        s = jnp.where(mask > 0, s, -1e30)
        m_prev = m_sc[h]                                # (tq, 1)
        m_new = jnp.maximum(m_prev, jnp.max(s, axis=-1, keepdims=True))
        alpha = jnp.exp(m_prev - m_new)
        p = jnp.exp(s - m_new)
        l_sc[h] = alpha * l_sc[h] + jnp.sum(p, axis=-1, keepdims=True)
        acc_sc[:, sl] = alpha * acc_sc[:, sl] + jnp.dot(
            p.astype(jnp.bfloat16), vb[:, sl], preferred_element_type=jnp.float32)
        m_sc[h] = m_new

    @pl.when(kv == pl.num_programs(2) - 1)
    def _():
        outs = [acc_sc[:, h * head_dim:(h + 1) * head_dim]
                * pl.reciprocal(l_sc[h], approx=True) for h in range(heads)]
        o_ref[0] = jnp.concatenate(outs, axis=-1).astype(o_ref.dtype)


@functools.partial(jax.jit, static_argnames=("heads", "head_dim"))
def pallas_attention(q, k, v, mask, heads, head_dim):
    """q: (B, Nq, h*d), k/v: (B, Nk, h*d), mask: (B, Nk) 1=keep / 0=drop."""
    B, Nq, HD = q.shape
    Nk = k.shape[1]
    scale = float(head_dim) ** -0.5
    tq = min(256, _round_up(Nq, 8))
    tkv = min(256, _round_up(Nk, 8))
    Nqp, Nkp = _round_up(Nq, tq), _round_up(Nk, tkv)
    qb = jnp.zeros((B, Nqp, HD), jnp.bfloat16).at[:, :Nq, :].set(q.astype(jnp.bfloat16))
    kb = jnp.zeros((B, Nkp, HD), jnp.bfloat16).at[:, :Nk, :].set(k.astype(jnp.bfloat16))
    vb = jnp.zeros((B, Nkp, HD), jnp.bfloat16).at[:, :Nk, :].set(v.astype(jnp.bfloat16))
    mb = jnp.zeros((B, 1, Nkp), jnp.float32).at[:, 0, :Nk].set(mask.astype(jnp.float32))
    grid = (B, Nqp // tq, Nkp // tkv)
    out = pl.pallas_call(
        functools.partial(_attention_kernel, heads=heads, head_dim=head_dim,
                          scale=scale),
        out_shape=jax.ShapeDtypeStruct((B, Nqp, HD), jnp.float32),
        grid_spec=pltpu.PrefetchScalarGridSpec(
            num_scalar_prefetch=0,
            grid=grid,
            in_specs=[
                pl.BlockSpec((1, tq, HD), lambda b, i, j: (b, i, 0)),
                pl.BlockSpec((1, tkv, HD), lambda b, i, j: (b, j, 0)),
                pl.BlockSpec((1, tkv, HD), lambda b, i, j: (b, j, 0)),
                pl.BlockSpec((1, 1, tkv), lambda b, i, j: (b, 0, j)),
            ],
            out_specs=pl.BlockSpec((1, tq, HD), lambda b, i, j: (b, i, 0)),
            scratch_shapes=[pltpu.VMEM((heads, tq, 1), jnp.float32),
                            pltpu.VMEM((heads, tq, 1), jnp.float32),
                            pltpu.VMEM((tq, HD), jnp.float32)]),
        compiler_params=pltpu.CompilerParams(
            dimension_semantics=("parallel", "parallel", "arbitrary"),
            vmem_limit_bytes=_VMEM_LIMIT),
    )(qb, kb, vb, mb)
    return out[:, :Nq, :]


def _conv3x3_kernel(x_ref, w_ref, b_ref, o_ref, *, H, W):
    C = x_ref.shape[-1]
    cout = o_ref.shape[-1]
    xb = x_ref[0]                                       # (H+2, W+2, C) bf16
    acc = jnp.zeros((H * W, cout), jnp.float32)
    for di in range(3):
        for dj in range(3):
            a = xb[di:di + H, dj:dj + W, :].reshape(H * W, C)
            acc = acc + jnp.dot(a, w_ref[di * 3 + dj],
                                preferred_element_type=jnp.float32)
    acc = acc + b_ref[...]
    o_ref[0] = acc.reshape(H, W, cout).astype(o_ref.dtype)


@functools.partial(jax.jit, static_argnames=("cout",))
def pallas_conv3x3(x, wt, bias, cout):
    """x: (B, H, W, C) NHWC; wt: (9, C, cout) bf16 taps; bias: (1, cout) f32."""
    B, H, W, C = x.shape
    xp = jnp.pad(x.astype(jnp.bfloat16), ((0, 0), (1, 1), (1, 1), (0, 0)))
    # TODO(synk): at very large H*W the whole padded image per batch element no longer
    # fits VMEM; tile rows via manual overlapping-window DMA (pl.ANY + make_async_copy).
    return pl.pallas_call(
        functools.partial(_conv3x3_kernel, H=H, W=W),
        out_shape=jax.ShapeDtypeStruct((B, H, W, cout), jnp.float32),
        grid=(B,),
        in_specs=[
            pl.BlockSpec((1, H + 2, W + 2, C), lambda b: (b, 0, 0, 0)),
            pl.BlockSpec((9, C, cout), lambda b: (0, 0, 0)),
            pl.BlockSpec((1, cout), lambda b: (0, 0)),
        ],
        out_specs=pl.BlockSpec((1, H, W, cout), lambda b: (b, 0, 0, 0)),
        compiler_params=pltpu.CompilerParams(
            dimension_semantics=("parallel",),
            vmem_limit_bytes=_VMEM_LIMIT),
    )(xp, wt, bias)


# ----------------------------------------------------------------------------
# Parameter init helpers (deterministic, in-script, matmul-ready layouts)
# ----------------------------------------------------------------------------

class KeyGen:
    def __init__(self, key):
        self.key = key

    def __call__(self):
        self.key, sub = jax.random.split(self.key)
        return sub


def prep_matmul(w_kn, b):
    """w_kn: (K, N) -> padded bf16 (Kp, Np); bias -> (1, Np) f32. Done once at init."""
    K, N = w_kn.shape
    Kp, Np = _round_up(K, 128), _round_up(N, 128)
    wp = jnp.zeros((Kp, Np), jnp.bfloat16).at[:K, :N].set(w_kn.astype(jnp.bfloat16))
    bp = jnp.zeros((1, Np), jnp.float32)
    if b is not None:
        bp = bp.at[0, :N].set(b.astype(jnp.float32))
    return {"wp": wp, "bp": bp, "N": N}


def init_linear(kg, din, dout, bias=True, zero=False):
    if zero:
        w = jnp.zeros((dout, din), jnp.float32)
    else:
        w = jax.random.normal(kg(), (dout, din), jnp.float32) / math.sqrt(din)
    b = jnp.zeros((dout,), jnp.float32) if bias else None
    return prep_matmul(w.T, b)


def init_conv(kg, cin, cout, k, bias=True):
    w = jax.random.normal(kg(), (cout, cin, k, k), jnp.float32) / math.sqrt(cin * k * k)
    b = jnp.zeros((cout,), jnp.float32) if bias else None
    if k == 1:
        return {"kind": "1x1", "mm": prep_matmul(w.reshape(cout, cin).T, b)}
    if k == 3:
        wt = w.transpose(2, 3, 1, 0).reshape(9, cin, cout).astype(jnp.bfloat16)
        bias_p = jnp.zeros((1, cout), jnp.float32)
        if b is not None:
            bias_p = bias_p.at[0].set(b)
        return {"kind": "3x3", "wt": wt, "bias": bias_p, "cout": cout}
    if k == 2:  # stride-2 downsample
        wm = w.transpose(2, 3, 1, 0).reshape(4 * cin, cout)   # K order (di, dj, c)
        return {"kind": "2x2s2", "mm": prep_matmul(wm, b)}
    raise ValueError("unsupported kernel size")


def init_conv_transpose(kg, cin, cout):
    w = jax.random.normal(kg(), (cin, cout, 2, 2), jnp.float32) / math.sqrt(cin * 4)
    b = jnp.zeros((cout,), jnp.float32)
    wm = w.transpose(0, 2, 3, 1).reshape(cin, 4 * cout)       # N order (di, dj, cout)
    return {"mm": prep_matmul(wm, jnp.tile(b, 4)), "cout": cout}


# ----------------------------------------------------------------------------
# Primitive forwards (all NHWC, Pallas-driven)
# ----------------------------------------------------------------------------

def linear_forward(mm, x, apply_silu=False, residual=None):
    shp = x.shape
    res = None
    if residual is not None:
        res = residual.reshape(-1, mm["N"])
    out = _pallas_matmul(x.reshape(-1, shp[-1]), mm["wp"], mm["bp"],
                         n_cols=mm["N"], apply_silu=apply_silu, residual=res)
    return out.reshape(*shp[:-1], mm["N"])


def conv2d(p, x, apply_silu=False, residual=None):
    kind = p["kind"]
    if kind == "1x1":
        return linear_forward(p["mm"], x, apply_silu, residual)
    if kind == "3x3":
        out = pallas_conv3x3(x, p["wt"], p["bias"], cout=p["cout"])
        if apply_silu:
            out = out * jax.nn.sigmoid(out)
        if residual is not None:
            out = out + residual
        return out
    # 2x2 stride-2 downsample: space-to-depth, then the tiled Pallas matmul
    B, H, W, C = x.shape
    Ho, Wo = H // 2, W // 2
    cols = x.reshape(B, Ho, 2, Wo, 2, C).transpose(0, 1, 3, 2, 4, 5)
    cols = cols.reshape(B, Ho, Wo, 4 * C)
    return linear_forward(p["mm"], cols, apply_silu, residual)


def conv_transpose2d(p, x):
    """ConvTranspose2d(kernel=2, stride=2): NHWC -> (2H)(2W)."""
    B, H, W, _ = x.shape
    cout = p["cout"]
    out = linear_forward(p["mm"], x)                     # columns ordered (di, dj, cout)
    out = out.reshape(B, H, W, 2, 2, cout).transpose(0, 1, 3, 2, 4, 5)
    return out.reshape(B, 2 * H, 2 * W, cout)


def sinusoidal_pos_emb(t, dim):
    half = dim // 2
    emb = math.log(10000.0) / (half - 1)
    freqs = jnp.exp(jnp.arange(half, dtype=jnp.float32) * -emb)
    args = t.astype(jnp.float32)[:, None] * freqs[None, :]
    return jnp.concatenate([jnp.sin(args), jnp.cos(args)], axis=-1)


# ----------------------------------------------------------------------------
# Modules
# ----------------------------------------------------------------------------

def init_attention(kg, in_ch, out_ch, ctx_dim, head_dim):
    return {"q": init_linear(kg, in_ch, out_ch, bias=False),
            "k": init_linear(kg, ctx_dim, out_ch, bias=False),
            "v": init_linear(kg, ctx_dim, out_ch, bias=False),
            "out": init_linear(kg, out_ch, out_ch, bias=False),
            "heads": out_ch // head_dim, "head_dim": head_dim}


def attention_forward(p, x, context, context_mask=None, residual=None):
    B = x.shape[0]
    Nk = context.shape[1]
    q = linear_forward(p["q"], x)          # heads stay folded in the channel dim
    k = linear_forward(p["k"], context)
    v = linear_forward(p["v"], context)
    if context_mask is None:
        mask = jnp.ones((B, Nk), jnp.float32)
    else:
        mask = context_mask.astype(jnp.float32)
    out = pallas_attention(q, k, v, mask, heads=p["heads"], head_dim=p["head_dim"])
    return linear_forward(p["out"], out, residual=residual)


def init_cond_group_norm(kg, groups, C, ctx_dim):
    # PyTorch zero-inits this conditioning MLP (weight and bias) -> identity affine.
    return {"groups": groups, "mlp": init_linear(kg, ctx_dim, 2 * C, zero=True)}


def cond_group_norm_forward(p, x, time_embed, apply_silu=False):
    ctx = linear_forward(p["mlp"], jax.nn.silu(time_embed))      # (B, 2C)
    C = x.shape[-1]
    scale, shift = ctx[:, :C], ctx[:, C:]
    return pallas_group_norm(x, scale + 1.0, shift, groups=p["groups"],
                             apply_silu=apply_silu)


def init_block(kg, cin, cout, t_dim, kernel_size, groups, up_resolution):
    p = {"norm": init_cond_group_norm(kg, groups, cin, t_dim),
         "proj": init_conv(kg, cin, cout, kernel_size)}
    if up_resolution is not None and up_resolution:
        p["up"] = init_conv_transpose(kg, cin, cin)
    if up_resolution is not None and not up_resolution:
        p["down"] = init_conv(kg, cout, cout, 2)
    return p


def block_forward(p, x, time_embed, residual=None):
    x = cond_group_norm_forward(p["norm"], x, time_embed, apply_silu=True)  # GN + SiLU
    if "up" in p:
        x = conv_transpose2d(p["up"], x)
    if "down" in p:
        x = conv2d(p["proj"], x)
        x = conv2d(p["down"], x, residual=residual)      # residual fused in last matmul
    else:
        x = conv2d(p["proj"], x, residual=residual)
    return x


def init_resnet_block(kg, cin, cout, t_dim, groups, comp_ratio, up_resolutions):
    kernel_sizes = [1, 3, 3, 1]
    hidden = max(cin, cout) // comp_ratio
    hcs = [(cin, hidden), (hidden, hidden), (hidden, hidden), (hidden, cout)]
    p = {"blocks": [init_block(kg, i, o, t_dim, k, groups, ur)
                    for (i, o), k, ur in zip(hcs, kernel_sizes, up_resolutions)]}
    if True in up_resolutions:
        p["sc_up"] = init_conv_transpose(kg, cin, cin)
    if cin != cout:
        p["sc_proj"] = init_conv(kg, cin, cout, 1)
    if False in up_resolutions:
        p["sc_down"] = init_conv(kg, cout, cout, 2)
    return p


def resnet_block_forward(p, x, time_embed):
    # Shortcut path first, then fuse it as the residual of the last block's matmul.
    shortcut = x
    if "sc_up" in p:
        shortcut = conv_transpose2d(p["sc_up"], shortcut)
    if "sc_proj" in p:
        shortcut = conv2d(p["sc_proj"], shortcut)
    if "sc_down" in p:
        shortcut = conv2d(p["sc_down"], shortcut)
    out = x
    for bp in p["blocks"][:-1]:
        out = block_forward(bp, out, time_embed)
    out = block_forward(p["blocks"][-1], out, time_embed, residual=shortcut)
    return out


def init_attention_block(kg, C, t_dim, ctx_dim, groups, head_dim, exp_ratio):
    hidden = exp_ratio * C
    return {"in_norm": init_cond_group_norm(kg, groups, C, t_dim),
            "attn": init_attention(kg, C, C, ctx_dim or C, head_dim),
            "out_norm": init_cond_group_norm(kg, groups, C, t_dim),
            "ff1": init_conv(kg, C, hidden, 1, bias=False),
            "ff2": init_conv(kg, hidden, C, 1, bias=False)}


def attention_block_forward(p, x, time_embed, context=None, context_mask=None):
    B, H, W, C = x.shape
    out = cond_group_norm_forward(p["in_norm"], x, time_embed)
    out_flat = out.reshape(B, H * W, C)                   # b (h w) c  (free in NHWC)
    ctx = context if context is not None else out_flat
    # residual add fused into the attention output projection
    attn = attention_forward(p["attn"], out_flat, ctx, context_mask,
                             residual=x.reshape(B, H * W, C))
    x = attn.reshape(B, H, W, C)
    out = cond_group_norm_forward(p["out_norm"], x, time_embed)
    out = conv2d(p["ff1"], out, apply_silu=True)          # 1x1 conv + SiLU fused
    x = conv2d(p["ff2"], out, residual=x)                 # residual fused into ff2
    return x


def init_attention_pooling(kg, num_channels, context_dim, head_dim):
    return {"attn": init_attention(kg, context_dim, num_channels, context_dim, head_dim)}


def attention_pooling_forward(p, x, context, context_mask=None):
    pooled = jnp.mean(context, axis=1, keepdims=True)
    out = attention_forward(p["attn"], pooled, context, context_mask,
                            residual=x[:, None, :])
    return out[:, 0, :]


def init_downsample_block(kg, cin, cout, t_dim, ctx_dim, num_blocks, groups,
                          head_dim, exp_ratio, comp_ratio, down_sample, self_attention):
    p = {}
    if self_attention:
        p["self_attn"] = init_attention_block(kg, cin, t_dim, None, groups, head_dim, exp_ratio)
    up_resolutions = [[None] * 4] * (num_blocks - 1) + \
                     [[None, None, (False if down_sample else None), None]]
    hcs = [(cin, cout)] + [(cout, cout)] * (num_blocks - 1)
    blocks = []
    for (ic, oc), ur in zip(hcs, up_resolutions):
        entry = {"res_in": init_resnet_block(kg, ic, oc, t_dim, groups, comp_ratio, [None] * 4)}
        if ctx_dim is not None:
            entry["attn"] = init_attention_block(kg, oc, t_dim, ctx_dim, groups, head_dim, exp_ratio)
        entry["res_out"] = init_resnet_block(kg, oc, oc, t_dim, groups, comp_ratio, ur)
        blocks.append(entry)
    p["blocks"] = blocks
    return p


def downsample_block_forward(p, x, time_embed, context=None, context_mask=None):
    if "self_attn" in p:
        x = attention_block_forward(p["self_attn"], x, time_embed)
    for entry in p["blocks"]:
        x = resnet_block_forward(entry["res_in"], x, time_embed)
        if "attn" in entry:
            x = attention_block_forward(entry["attn"], x, time_embed, context, context_mask)
        x = resnet_block_forward(entry["res_out"], x, time_embed)
    return x


def init_upsample_block(kg, cin, cat_dim, cout, t_dim, ctx_dim, num_blocks, groups,
                        head_dim, exp_ratio, comp_ratio, up_sample, self_attention):
    up_resolutions = [[None, (True if up_sample else None), None, None]] + \
                     [[None] * 4] * (num_blocks - 1)
    hcs = [(cin + cat_dim, cin)] + [(cin, cin)] * (num_blocks - 2) + [(cin, cout)]
    blocks = []
    for (ic, oc), ur in zip(hcs, up_resolutions):
        entry = {"res_in": init_resnet_block(kg, ic, ic, t_dim, groups, comp_ratio, ur)}
        if ctx_dim is not None:
            entry["attn"] = init_attention_block(kg, ic, t_dim, ctx_dim, groups, head_dim, exp_ratio)
        entry["res_out"] = init_resnet_block(kg, ic, oc, t_dim, groups, comp_ratio, [None] * 4)
        blocks.append(entry)
    p = {"blocks": blocks}
    if self_attention:
        p["self_attn"] = init_attention_block(kg, cout, t_dim, None, groups, head_dim, exp_ratio)
    return p


def upsample_block_forward(p, x, time_embed, context=None, context_mask=None):
    for entry in p["blocks"]:
        x = resnet_block_forward(entry["res_in"], x, time_embed)
        if "attn" in entry:
            x = attention_block_forward(entry["attn"], x, time_embed, context, context_mask)
        x = resnet_block_forward(entry["res_out"], x, time_embed)
    if "self_attn" in p:
        x = attention_block_forward(p["self_attn"], x, time_embed)
    return x


def init_controlnet(kg, model_channels, init_channels, num_channels, t_dim, ctx_dim,
                    groups, head_dim, exp_ratio, comp_ratio, dim_mult, num_blocks,
                    add_cross, add_self):
    p = {"init_channels": init_channels,
         "time_lin1": init_linear(kg, init_channels, t_dim),
         "time_lin2": init_linear(kg, t_dim, t_dim),
         "pool": init_attention_pooling(kg, t_dim, ctx_dim, head_dim),
         "in_layer": init_conv(kg, num_channels, init_channels, 3)}
    hidden_dims = [init_channels] + [model_channels * m for m in dim_mult]
    in_out = list(zip(hidden_dims[:-1], hidden_dims[1:]))
    text_dims = [ctx_dim if e else None for e in add_cross]
    num_levels = len(in_out)
    downs = []
    for level, ((ci, co), nb, td, sa) in enumerate(zip(in_out, num_blocks, text_dims, add_self)):
        ds = level != num_levels - 1
        downs.append(init_downsample_block(kg, ci, co, t_dim, td, nb, groups, head_dim,
                                           exp_ratio, comp_ratio, ds, sa))
    p["downs"] = downs
    p["num_levels"] = num_levels
    return p


def controlnet_forward(p, x, t, context=None, context_mask=None):
    te = sinusoidal_pos_emb(t, p["init_channels"])
    te = linear_forward(p["time_lin1"], te, apply_silu=True)
    te = linear_forward(p["time_lin2"], te)
    if context is not None:
        te = attention_pooling_forward(p["pool"], te, context, context_mask)
    hidden_states = []
    x = conv2d(p["in_layer"], x)
    for level, dp in enumerate(p["downs"]):
        x = downsample_block_forward(dp, x, te, context, context_mask)
        if level != p["num_levels"] - 1:
            hidden_states.append(x)
    return hidden_states


def init_control_unet(kg, model_channels, init_channels=None, num_channels=3,
                      out_channels=4, time_embed_dim=None, context_dim=None, groups=32,
                      head_dim=64, expansion_ratio=4, compression_ratio=2,
                      dim_mult=(1, 2, 4, 8), num_blocks=(3, 3, 3, 3),
                      add_cross_attention=(False, True, True, True),
                      add_self_attention=(False, True, True, True),
                      control_net_channels=5):
    init_channels = init_channels or model_channels
    p = {"init_channels": init_channels, "groups": groups,
         "time_lin1": init_linear(kg, init_channels, time_embed_dim),
         "time_lin2": init_linear(kg, time_embed_dim, time_embed_dim),
         "pool": init_attention_pooling(kg, time_embed_dim, context_dim, head_dim),
         "in_layer": init_conv(kg, num_channels, init_channels, 3)}
    hidden_dims = [init_channels] + [model_channels * m for m in dim_mult]
    in_out = list(zip(hidden_dims[:-1], hidden_dims[1:]))
    text_dims = [context_dim if e else None for e in add_cross_attention]
    num_levels = len(in_out)
    cat_dims = []
    downs = []
    for level, ((ci, co), nb, td, sa) in enumerate(
            zip(in_out, num_blocks, text_dims, add_self_attention)):
        ds = level != num_levels - 1
        cat_dims.append(co if level != num_levels - 1 else 0)
        downs.append(init_downsample_block(kg, ci, co, time_embed_dim, td, nb, groups,
                                           head_dim, expansion_ratio, compression_ratio, ds, sa))
    p["downs"] = downs
    ups = []
    for level, ((co, ci), nb, td, sa) in enumerate(
            zip(reversed(in_out), reversed(num_blocks), reversed(text_dims),
                reversed(add_self_attention))):
        us = level != 0
        ups.append(init_upsample_block(kg, ci, cat_dims.pop(), co, time_embed_dim, td, nb,
                                       groups, head_dim, expansion_ratio, compression_ratio,
                                       us, sa))
    p["ups"] = ups
    p["out_norm_gamma"] = jnp.ones((init_channels,), jnp.float32)
    p["out_norm_beta"] = jnp.zeros((init_channels,), jnp.float32)
    p["out_conv"] = init_conv(kg, init_channels, out_channels, 3)
    p["num_levels"] = num_levels
    p["control_net"] = init_controlnet(kg, model_channels, init_channels,
                                       control_net_channels, time_embed_dim, context_dim,
                                       groups, head_dim, expansion_ratio, compression_ratio,
                                       dim_mult, num_blocks, add_cross_attention,
                                       add_self_attention)
    return p


def control_unet_forward(p, x, t, context=None, context_mask=None, control_net_data=None):
    x = jnp.transpose(x, (0, 2, 3, 1))                          # NCHW -> NHWC
    cn = jnp.transpose(control_net_data, (0, 2, 3, 1))
    te = sinusoidal_pos_emb(t, p["init_channels"])
    te = linear_forward(p["time_lin1"], te, apply_silu=True)
    te = linear_forward(p["time_lin2"], te)
    if context is not None:
        te = attention_pooling_forward(p["pool"], te, context, context_mask)
    control_hiddens = controlnet_forward(p["control_net"], cn, t, context, context_mask)
    hidden_states = []
    x = conv2d(p["in_layer"], x)
    for level, dp in enumerate(p["downs"]):
        x = downsample_block_forward(dp, x, te, context, context_mask)
        if level != p["num_levels"] - 1:
            x = x + control_hiddens.pop(0)
            hidden_states.append(x)
    for level, up in enumerate(p["ups"]):
        if level != 0:
            x = jnp.concatenate([x, hidden_states.pop()], axis=-1)
        x = upsample_block_forward(up, x, te, context, context_mask)
    # out_layer: GroupNorm(affine) + SiLU (fused in the GN kernel) + Conv3x3
    B = x.shape[0]
    gamma = jnp.broadcast_to(p["out_norm_gamma"][None, :], (B, p["init_channels"]))
    beta = jnp.broadcast_to(p["out_norm_beta"][None, :], (B, p["init_channels"]))
    x = pallas_group_norm(x, gamma, beta, groups=p["groups"], apply_silu=True)
    x = conv2d(p["out_conv"], x)
    return jnp.transpose(x, (0, 3, 1, 2))                       # NHWC -> NCHW


# ----------------------------------------------------------------------------
# Main
# ----------------------------------------------------------------------------

if __name__ == "__main__":
    kg = KeyGen(jax.random.PRNGKey(0))

    params = init_control_unet(
        kg, model_channels=32, init_channels=32, num_channels=3, out_channels=4,
        time_embed_dim=64, context_dim=32, groups=8, head_dim=16,
        expansion_ratio=4, compression_ratio=2,
        dim_mult=(1, 2), num_blocks=(2, 2),
        add_cross_attention=(False, True), add_self_attention=(False, True),
        control_net_channels=5)

    k1, k2, k3 = jax.random.split(jax.random.PRNGKey(0), 3)
    B, H, W, S = 2, 16, 16, 8
    x = jax.random.normal(k1, (B, 3, H, W), jnp.float32)
    t = jnp.array([3.0, 7.0], jnp.float32)
    context = jax.random.normal(k2, (B, S, 32), jnp.float32)
    context_mask = jnp.ones((B, S), dtype=bool).at[1, S - 2:].set(False)
    control_net_data = jax.random.normal(k3, (B, 5, H, W), jnp.float32)

    # Single jit over the whole forward pass: params are closed over (their python
    # metadata stays static), so all Pallas calls + XLA glue compile into one executable.
    fwd = jax.jit(functools.partial(control_unet_forward, params))
    out = fwd(x, t, context, context_mask, control_net_data)
    out = jax.block_until_ready(out)
    assert out.shape == (B, 4, H, W), out.shape
    assert bool(jnp.all(jnp.isfinite(out)))
    print("KERNEL_OK")
</pallas_src>

<mosaic_0001>
module attributes {stable_mosaic.version = 11 : i64} {
  func.func @_matmul_kernel(%arg0: i32, %arg1: i32, %arg2: i32, %arg3: memref<128x128xbf16, #tpu.memory_space<vmem>>, %arg4: memref<128x128xbf16, #tpu.memory_space<vmem>>, %arg5: memref<1x128xf32, #tpu.memory_space<vmem>>, %arg6: memref<128x128xf32, #tpu.memory_space<vmem>>, %arg7: memref<128x128xf32, #tpu.memory_space<vmem>>) attributes {dimension_semantics = [#tpu.dimension_semantics<parallel>, #tpu.dimension_semantics<parallel>, #tpu.dimension_semantics<arbitrary>], iteration_bounds = array<i64: 1, 1, 1>, scalar_prefetch = 0 : i64, scratch_operands = 1 : i64, tpu.core_type = #tpu.core_type<tc>, window_params = [{transform_indices = @transform_0, window_bounds = array<i64: 128, 128>}, {transform_indices = @transform_1, window_bounds = array<i64: 128, 128>}, {transform_indices = @transform_2, window_bounds = array<i64: 1, 128>}, {transform_indices = @transform_3, window_bounds = array<i64: 128, 128>}]} {
    %c0_i32 = arith.constant 0 : i32
    %0 = arith.cmpi eq, %arg2, %c0_i32 : i32
    %1 = arith.extui %0 : i1 to i32
    %c0_i32_0 = arith.constant 0 : i32
    %2 = arith.cmpi ne, %1, %c0_i32_0 : i32
    scf.if %2 {
      %cst_10 = arith.constant 0.000000e+00 : f32
      %12 = vector.broadcast %cst_10 : f32 to vector<128x128xf32>
      %c0_11 = arith.constant 0 : index
      %c0_12 = arith.constant 0 : index
      %13 = vector.load %arg7[%c0_11, %c0_12] : memref<128x128xf32, #tpu.memory_space<vmem>>, vector<128x128xf32>
      tpu.vector_store %arg7[%c0_11, %c0_12], %12 {strides = array<i32>} : memref<128x128xf32, #tpu.memory_space<vmem>>, vector<128x128xf32>,
    } else {
    }
    %c0 = arith.constant 0 : index
    %c0_1 = arith.constant 0 : index
    %3 = vector.load %arg7[%c0, %c0_1] : memref<128x128xf32, #tpu.memory_space<vmem>>, vector<128x128xf32>
    %c0_2 = arith.constant 0 : index
    %c0_3 = arith.constant 0 : index
    %4 = vector.load %arg3[%c0_2, %c0_3] : memref<128x128xbf16, #tpu.memory_space<vmem>>, vector<128x128xbf16>
    %c0_4 = arith.constant 0 : index
    %c0_5 = arith.constant 0 : index
    %5 = vector.load %arg4[%c0_4, %c0_5] : memref<128x128xbf16, #tpu.memory_space<vmem>>, vector<128x128xbf16>
    %cst = arith.constant dense<0.000000e+00> : vector<128x128xf32>
    %6 = tpu.matmul %4, %5, %cst {dimension_numbers = #tpu.dot_dimension_numbers<[1], [0], [0], [1], [0, 0, 1, 1], [], []>} : vector<128x128xbf16>, vector<128x128xbf16>, vector<128x128xf32> -> vector<128x128xf32>
    %7 = arith.addf %3, %6 : vector<128x128xf32>
    %c0_6 = arith.constant 0 : index
    %c0_7 = arith.constant 0 : index
    %8 = vector.load %arg7[%c0_6, %c0_7] : memref<128x128xf32, #tpu.memory_space<vmem>>, vector<128x128xf32>
    tpu.vector_store %arg7[%c0_6, %c0_7], %7 {strides = array<i32>} : memref<128x128xf32, #tpu.memory_space<vmem>>, vector<128x128xf32>,
    %c0_i32_8 = arith.constant 0 : i32
    %9 = arith.cmpi eq, %arg2, %c0_i32_8 : i32
    %10 = arith.extui %9 : i1 to i32
    %c0_i32_9 = arith.constant 0 : i32
    %11 = arith.cmpi ne, %10, %c0_i32_9 : i32
    scf.if %11 {
      %c0_10 = arith.constant 0 : index
      %c0_11 = arith.constant 0 : index
      %12 = vector.load %arg7[%c0_10, %c0_11] : memref<128x128xf32, #tpu.memory_space<vmem>>, vector<128x128xf32>
      %c0_12 = arith.constant 0 : index
      %c0_13 = arith.constant 0 : index
      %13 = vector.load %arg5[%c0_12, %c0_13] : memref<1x128xf32, #tpu.memory_space<vmem>>, vector<1x128xf32>
      %14 = vector.broadcast %13 : vector<1x128xf32> to vector<128x128xf32>
      %15 = arith.addf %12, %14 : vector<128x128xf32>
      %16 = arith.negf %15 : vector<128x128xf32>
      %17 = math.exp %16 : vector<128x128xf32>
      %cst_14 = arith.constant 1.000000e+00 : f32
      %18 = vector.broadcast %cst_14 : f32 to vector<128x128xf32>
      %19 = arith.addf %18, %17 : vector<128x128xf32>
      %20 = arith.divf %18, %19 : vector<128x128xf32>
      %21 = arith.mulf %15, %20 : vector<128x128xf32>
      %c0_15 = arith.constant 0 : index
      %c0_16 = arith.constant 0 : index
      %22 = vector.load %arg6[%c0_15, %c0_16] : memref<128x128xf32, #tpu.memory_space<vmem>>, vector<128x128xf32>
      tpu.vector_store %arg6[%c0_15, %c0_16], %21 {strides = array<i32>} : memref<128x128xf32, #tpu.memory_space<vmem>>, vector<128x128xf32>,
    } else {
    }
    return
  }
  func.func @transform_0(%arg0: i32, %arg1: i32, %arg2: i32) -> (i32, i32) {
    %c0_i32 = arith.constant 0 : i32
    return %arg0, %arg2 : i32, i32
  }
  func.func @transform_1(%arg0: i32, %arg1: i32, %arg2: i32) -> (i32, i32) {
    %c0_i32 = arith.constant 0 : i32
    return %arg2, %arg1 : i32, i32
  }
  func.func @transform_2(%arg0: i32, %arg1: i32, %arg2: i32) -> (i32, i32) {
    %c0_i32 = arith.constant 0 : i32
    %c0_i32_0 = arith.constant 0 : i32
    return %c0_i32, %arg1 : i32, i32
  }
  func.func @transform_3(%arg0: i32, %arg1: i32, %arg2: i32) -> (i32, i32) {
    %c0_i32 = arith.constant 0 : i32
    return %arg0, %arg1 : i32, i32
  }
}

</mosaic_0001>

<bundles_post_ra>
// kernel: _pallas_matmul.1
= control target key start
LH: loop header
LB: loop body
LE: loop exit
PB: predicated region body
PF: predicated region fallthrough
CT: control target
= control target key end

     0   :  { %s842_s1 = inlined_call_operand.vmem [shape: bf16[128,128], index: 1, kind: input, shape index: {}]   ;;  %s843_s0 = inlined_call_operand.vmem [shape: bf16[128,128], index: 0, kind: input, shape index: {}]   ;;  %s844_s2 = inlined_call_operand.vmem [shape: f32[1,128], index: 2, kind: input, shape index: {}]   ;;  %s845_s3 = inlined_call_operand.vmem [shape: f32[128,128], index: 3, kind: output, shape index: {}]  }
   0x1   :  { %v579_v0 = vld [vmem:[%s842_s1 + $0x38] sm:$0xff]   ;;  %v580_v1 = vld [vmem:[%s842_s1 + $0x30] sm:$0xff]   ;;  %v581_v2 = vld [vmem:[%s842_s1 + $0x28] sm:$0xff]  }
   0x2   :  { %531 = vmatprep.subr.bf16.mxu0 %v579_v0  ;;  %563 = vmatprep.subr.bf16.mxu1 %v579_v0  ;;  %v582_v3 = vld [vmem:[%s842_s1 + $0x20] sm:$0xff]   ;;  %v583_v6 = vld [vmem:[%s842_s1 + $0x18] sm:$0xff]   ;;  %v584_v7 = vld [vmem:[%s842_s1 + $0x10] sm:$0xff]  }
   0x3   :  { %532 = vmatpush3.bf16.msra.mxu0 %v579_v0  ;;  %571 = vmatpush3.bf16.msra.mxu1 %v579_v0  ;;  %v587_v4 = vld [vmem:[%s843_s0] sm:$0xff]   ;;  %v585_v8 = vld [vmem:[%s842_s1 + $0x8] sm:$0xff]   ;;  %v591_v12 = vld [vmem:[%s843_s0 + $0x10] sm:$0xff]  }
   0x4   :  { %533 = vmatprep.subr.bf16.mxu0 %v580_v1  ;;  %564 = vmatprep.subr.bf16.mxu1 %v580_v1  ;;  %v588_v5 = vld [vmem:[%s843_s0 + $0x20] sm:$0xff]   ;;  %v589_v10 = vld [vmem:[%s843_s0 + $0x8] sm:$0xff]   ;;  %v592_v13 = vld [vmem:[%s843_s0 + $0x30] sm:$0xff]  }
   0x5   :  { %547 = vmatprep.mubr.bf16.mxu0 %v587_v4  ;;  %555 = vmatprep.mubr.bf16.mxu1 %v588_v5  ;;  %v586_v9 = vld [vmem:[%s842_s1] sm:$0xff]   ;;  %v590_v11 = vld [vmem:[%s843_s0 + $0x28] sm:$0xff]   ;;  %v593_v14 = vld [vmem:[%s843_s0 + $0x18] sm:$0xff]  }
   0x6   :  { %v594_v15 = vld [vmem:[%s843_s0 + $0x38] sm:$0xff]   ;;  %v498_v16 = vld [vmem:[%s844_s2] ss:$0 sm:$0xff] }
   0x7   :  { %534 = vmatpush3.bf16.msra.mxu0 %v580_v1  ;;  %572 = vmatpush3.bf16.msra.mxu1 %v580_v1 }
   0x8   :  { %535 = vmatprep.subr.bf16.mxu0 %v581_v2  ;;  %565 = vmatprep.subr.bf16.mxu1 %v581_v2 }
   0xb   :  { %536 = vmatpush3.bf16.msra.mxu0 %v581_v2  ;;  %573 = vmatpush3.bf16.msra.mxu1 %v581_v2 }
   0xc   :  { %537 = vmatprep.subr.bf16.mxu0 %v582_v3  ;;  %566 = vmatprep.subr.bf16.mxu1 %v582_v3 }
   0xf   :  { %538 = vmatpush3.bf16.msra.mxu0 %v582_v3  ;;  %574 = vmatpush3.bf16.msra.mxu1 %v582_v3 }
  0x10   :  { %539 = vmatprep.subr.bf16.mxu0 %v583_v6  ;;  %567 = vmatprep.subr.bf16.mxu1 %v583_v6 }
  0x13   :  { %540 = vmatpush3.bf16.msra.mxu0 %v583_v6  ;;  %575 = vmatpush3.bf16.msra.mxu1 %v583_v6 }
  0x14   :  { %541 = vmatprep.subr.bf16.mxu0 %v584_v7  ;;  %568 = vmatprep.subr.bf16.mxu1 %v584_v7 }
  0x17   :  { %542 = vmatpush3.bf16.msra.mxu0 %v584_v7  ;;  %576 = vmatpush3.bf16.msra.mxu1 %v584_v7 }
  0x18   :  { %543 = vmatprep.subr.bf16.mxu0 %v585_v8  ;;  %569 = vmatprep.subr.bf16.mxu1 %v585_v8 }
  0x1b   :  { %544 = vmatpush3.bf16.msra.mxu0 %v585_v8  ;;  %577 = vmatpush3.bf16.msra.mxu1 %v585_v8 }
  0x1c   :  { %545 = vmatprep.subr.bf16.mxu0 %v586_v9  ;;  %570 = vmatprep.subr.bf16.mxu1 %v586_v9 }
  0x1f   :  { %546 = vmatpush3.bf16.msra.mxu0 %v586_v9  ;;  %578 = vmatpush3.bf16.msra.mxu1 %v586_v9 }
  0x22   :  { %548 = vmatmul.mubr.bf16.vlgmr.msra.gmra.mxu0 %v589_v10  ;;  %556 = vmatmul.mubr.bf16.vlgmr.msra.gmra.mxu1 %v590_v11 }
  0x23   :  { %551 = vmatprep.mubr.bf16.mxu0 %v591_v12  ;;  %559 = vmatprep.mubr.bf16.mxu1 %v592_v13 }
  0x2a   :  { %552 = vmatmul.mubr.bf16.gmra.mxu0 %v593_v14  ;;  %560 = vmatmul.mubr.bf16.gmra.mxu1 %v594_v15 }
  0xe2   :  { %v549_v17 = vpop.f32.mrf.mxu0  ;;  %v557_v18 = vpop.f32.mrf.mxu1 }
  0xe3   :  { %v730_v19 = vadd.f32 %v549_v17, %v498_v16  ;;  %v732_v20 = vadd.f32 %v557_v18, %v498_v16 }
  0xe4   :  { %v213_v21 = vpop.f32.mrf.mxu0  ;;  %v245_v22 = vpop.f32.mrf.mxu1 }
  0xe5   :  { %v501_v23 = vmul.f32 -1.442695, %v730_v19  ;;  %v509_v24 = vmul.f32 -1.442695, %v732_v20  ;;  %v736_v25 = vadd.f32 %v498_v16, %v213_v21  ;;  %v738_v26 = vadd.f32 %v498_v16, %v245_v22 }
  0xe6   :  { %v550_v27 = vpop.f32.mrf.mxu0  ;;  %v558_v28 = vpop.f32.mrf.mxu1 }
  0xe7   :  { %595 = vpow2.f32 %v501_v23  ;;  %v499_v29 = vmul.f32 -1.442695, %v736_v25  ;;  %v507_v30 = vmul.f32 -1.442695, %v738_v26  ;;  %v742_v31 = vadd.f32 %v550_v27, %v498_v16 }
  0xe8   :  { %597 = vpow2.f32 %v509_v24  ;;  %v744_v32 = vadd.f32 %v558_v28, %v498_v16  ;;  %v216_v33 = vpop.f32.mrf.mxu0  ;;  %v248_v34 = vpop.f32.mrf.mxu1 }
  0xe9   :  { %599 = vpow2.f32 %v499_v29  ;;  %v502_v35 = vmul.f32 -1.442695, %v742_v31  ;;  %v747_v36 = vadd.f32 %v498_v16, %v216_v33  ;;  %v749_v37 = vadd.f32 %v498_v16, %v248_v34 }
  0xea   :  { %601 = vpow2.f32 %v507_v30  ;;  %v510_v38 = vmul.f32 -1.442695, %v744_v32  ;;  %v553_v39 = vpop.f32.mrf.mxu0  ;;  %v561_v40 = vpop.f32.mrf.mxu1 }
  0xeb   :  { %603 = vpow2.f32 %v502_v35  ;;  %v500_v41 = vmul.f32 -1.442695, %v747_v36  ;;  %v508_v42 = vmul.f32 -1.442695, %v749_v37  ;;  %v754_v43 = vadd.f32 %v553_v39, %v498_v16 }
  0xec   :  { %605 = vpow2.f32 %v510_v38  ;;  %v756_v44 = vadd.f32 %v561_v40, %v498_v16  ;;  %v229_v45 = vpop.f32.mrf.mxu0  ;;  %v261_v46 = vpop.f32.mrf.mxu1 }
  0xed   :  { %607 = vpow2.f32 %v500_v41  ;;  %v505_v47 = vmul.f32 -1.442695, %v754_v43  ;;  %v759_v48 = vadd.f32 %v498_v16, %v229_v45  ;;  %v761_v49 = vadd.f32 %v498_v16, %v261_v46 }
  0xee   :  { %609 = vpow2.f32 %v508_v42  ;;  %v513_v50 = vmul.f32 -1.442695, %v756_v44  ;;  %v554_v51 = vpop.f32.mrf.mxu0  ;;  %v562_v52 = vpop.f32.mrf.mxu1 }
  0xef   :  { %611 = vpow2.f32 %v505_v47  ;;  %v503_v53 = vmul.f32 -1.442695, %v759_v48  ;;  %v511_v54 = vmul.f32 -1.442695, %v761_v49  ;;  %v766_v55 = vadd.f32 %v554_v51, %v498_v16 }
  0xf0   :  { %613 = vpow2.f32 %v513_v50  ;;  %v768_v56 = vadd.f32 %v562_v52, %v498_v16  ;;  %v232_v57 = vpop.f32.mrf.mxu0  ;;  %v264_v58 = vpop.f32.mrf.mxu1 }
  0xf1   :  { %615 = vpow2.f32 %v503_v53  ;;  %v506_v59 = vmul.f32 -1.442695, %v766_v55  ;;  %v771_v60 = vadd.f32 %v498_v16, %v232_v57  ;;  %v773_v61 = vadd.f32 %v498_v16, %v264_v58 }
  0xf2   :  { %617 = vpow2.f32 %v511_v54  ;;  %v514_v62 = vmul.f32 -1.442695, %v768_v56 }
  0xf3   :  { %619 = vpow2.f32 %v506_v59  ;;  %v504_v63 = vmul.f32 -1.442695, %v771_v60  ;;  %v512_v0 = vmul.f32 -1.442695, %v773_v61 }
  0xf4   :  { %v596_v1 = vpop.eup %595  ;;  %621 = vpow2.f32 %v514_v62 }
  0xf5   :  { %v598_v2 = vpop.eup %597  ;;  %v400_v3 = vadd.f32 1.0, %v596_v1  ;;  %623 = vpow2.f32 %v504_v63 }
  0xf6   :  { %v600_v4 = vpop.eup %599  ;;  %v408_v5 = vadd.f32 1.0, %v598_v2  ;;  %625 = vpow2.f32 %v512_v0 }
  0xf7   :  { %v602_v6 = vpop.eup %601  ;;  %627 = vrcp.f32 %v400_v3  ;;  %v398_v7 = vadd.f32 1.0, %v600_v4 }
  0xf8   :  { %v604_v8 = vpop.eup %603  ;;  %629 = vrcp.f32 %v408_v5  ;;  %v406_v9 = vadd.f32 1.0, %v602_v6 }
  0xf9   :  { %v606_v10 = vpop.eup %605  ;;  %631 = vrcp.f32 %v398_v7  ;;  %v401_v11 = vadd.f32 1.0, %v604_v8 }
  0xfa   :  { %v608_v12 = vpop.eup %607  ;;  %633 = vrcp.f32 %v406_v9  ;;  %v409_v13 = vadd.f32 1.0, %v606_v10 }
  0xfb   :  { %v610_v14 = vpop.eup %609  ;;  %635 = vrcp.f32 %v401_v11  ;;  %v399_v15 = vadd.f32 1.0, %v608_v12 }
  0xfc   :  { %v612_v16 = vpop.eup %611  ;;  %637 = vrcp.f32 %v409_v13  ;;  %v407_v17 = vadd.f32 1.0, %v610_v14 }
  0xfd   :  { %v614_v18 = vpop.eup %613  ;;  %639 = vrcp.f32 %v399_v15  ;;  %v404_v21 = vadd.f32 1.0, %v612_v16 }
  0xfe   :  { %v616_v22 = vpop.eup %615  ;;  %641 = vrcp.f32 %v407_v17  ;;  %v412_v23 = vadd.f32 1.0, %v614_v18 }
  0xff   :  { %v618_v24 = vpop.eup %617  ;;  %643 = vrcp.f32 %v404_v21  ;;  %v402_v27 = vadd.f32 1.0, %v616_v22 }
 0x100   :  { %v620_v28 = vpop.eup %619  ;;  %645 = vrcp.f32 %v412_v23  ;;  %v410_v29 = vadd.f32 1.0, %v618_v24 }
 0x101   :  { %v622_v30 = vpop.eup %621  ;;  %647 = vrcp.f32 %v402_v27  ;;  %v405_v33 = vadd.f32 1.0, %v620_v28 }
 0x102   :  { %v624_v34 = vpop.eup %623  ;;  %649 = vrcp.f32 %v410_v29  ;;  %v413_v35 = vadd.f32 1.0, %v622_v30 }
 0x103   :  { %v626_v38 = vpop.eup %625  ;;  %651 = vrcp.f32 %v405_v33  ;;  %v403_v39 = vadd.f32 1.0, %v624_v34 }
 0x104   :  { %v628_v40 = vpop.eup %627  ;;  %653 = vrcp.f32 %v413_v35  ;;  %v411_v41 = vadd.f32 1.0, %v626_v38 }
 0x105   :  { %v630_v42 = vpop.eup %629  ;;  %v448_v45 = vmul.f32 %v628_v40, %v730_v19  ;;  %655 = vrcp.f32 %v403_v39 }
 0x106   :  { %v632_v46 = vpop.eup %631  ;;  %v456_v47 = vmul.f32 %v630_v42, %v732_v20  ;;  %657 = vrcp.f32 %v411_v41 }
 0x107   :  { %v634_v50 = vpop.eup %633  ;;  %464 = vst [vmem:[%s845_s3 + $0x10] sm:$0xff] %v448_v45  ;;  %v446_v51 = vmul.f32 %v632_v46, %v736_v25 }
 0x108   :  { %v636_v52 = vpop.eup %635  ;;  %472 = vst [vmem:[%s845_s3 + $0x50] sm:$0xff] %v456_v47  ;;  %v454_v53 = vmul.f32 %v634_v50, %v738_v26 }
 0x109   :  { %v638_v19 = vpop.eup %637  ;;  %462 = vst [vmem:[%s845_s3] sm:$0xff] %v446_v51  ;;  %v449_v20 = vmul.f32 %v636_v52, %v742_v31 }
 0x10a   :  { %v640_v54 = vpop.eup %639  ;;  %470 = vst [vmem:[%s845_s3 + $0x40] sm:$0xff] %v454_v53  ;;  %v457_v25 = vmul.f32 %v638_v19, %v744_v32 }
 0x10b   :  { %v642_v57 = vpop.eup %641  ;;  %465 = vst [vmem:[%s845_s3 + $0x18] sm:$0xff] %v449_v20  ;;  %v447_v26 = vmul.f32 %v640_v54, %v747_v36 }
 0x10c   :  { %v644_v58 = vpop.eup %643  ;;  %473 = vst [vmem:[%s845_s3 + $0x58] sm:$0xff] %v457_v25  ;;  %v455_v31 = vmul.f32 %v642_v57, %v749_v37 }
 0x10d   :  { %v646_v59 = vpop.eup %645  ;;  %463 = vst [vmem:[%s845_s3 + $0x8] sm:$0xff] %v447_v26  ;;  %v452_v32 = vmul.f32 %v644_v58, %v754_v43 }
 0x10e   :  { %v648_v62 = vpop.eup %647  ;;  %471 = vst [vmem:[%s845_s3 + $0x48] sm:$0xff] %v455_v31  ;;  %v460_v36 = vmul.f32 %v646_v59, %v756_v44 }
 0x10f   :  { %v650_v63 = vpop.eup %649  ;;  %468 = vst [vmem:[%s845_s3 + $0x30] sm:$0xff] %v452_v32  ;;  %v450_v37 = vmul.f32 %v648_v62, %v759_v48 }
 0x110   :  { %v652_v0 = vpop.eup %651  ;;  %476 = vst [vmem:[%s845_s3 + $0x70] sm:$0xff] %v460_v36  ;;  %v458_v43 = vmul.f32 %v650_v63, %v761_v49 }
 0x111   :  { %v654_v1 = vpop.eup %653  ;;  %466 = vst [vmem:[%s845_s3 + $0x20] sm:$0xff] %v450_v37  ;;  %v453_v44 = vmul.f32 %v652_v0, %v766_v55 }
 0x112   :  { %v656_v2 = vpop.eup %655  ;;  %474 = vst [vmem:[%s845_s3 + $0x60] sm:$0xff] %v458_v43  ;;  %v461_v48 = vmul.f32 %v654_v1, %v768_v56 }
 0x113   :  { %v658_v3 = vpop.eup %657  ;;  %469 = vst [vmem:[%s845_s3 + $0x38] sm:$0xff] %v453_v44  ;;  %v451_v49 = vmul.f32 %v656_v2, %v771_v60 }
 0x114   :  { %477 = vst [vmem:[%s845_s3 + $0x78] sm:$0xff] %v461_v48  ;;  %v459_v55 = vmul.f32 %v658_v3, %v773_v61 }
 0x115   :  { %467 = vst [vmem:[%s845_s3 + $0x28] sm:$0xff] %v451_v49 }
 0x116   :  { %475 = vst [vmem:[%s845_s3 + $0x68] sm:$0xff] %v459_v55 }

</bundles_post_ra>
